<compile_context>
chip_gen: v7x
topology: tpu7x:2x2x1
jax: 0.10.0
libtpu: 0.0.40
codegen_flags: <defaults>
</compile_context>

<pallas_src>
import jax
import jax.numpy as jnp
from jax.experimental import pallas as pl
from jax.experimental.pallas import tpu as pltpu

INPUT_DIM = 13            # len(necessary_columns)
LATENT_DIM = 2
HIDDEN = 128
OUT_PAD = 128             # recon output padded to a full lane width
MAX_BLOCK_B = 512         # batch tile (rows); per-step overhead amortized, VMEM-safe


def _round_up(n, m):
    return ((n + m - 1) // m) * m


def vae_forward_kernel(
    x_ref, eps_ref,
    w1_ref, b1_ref,
    w2_ref, b2_ref,
    w3_ref, b3_ref,
    w4_ref, b4_ref,
    head_ref, recon_ref,
):
    x = x_ref[...]                                                   # (TB, 13) f32

    # ---- encoder ----
    h1 = jnp.dot(x, w1_ref[...], preferred_element_type=jnp.float32) + b1_ref[...]
    h1 = jnp.maximum(h1, 0.0)                                        # (TB, 128)

    # fused head: [mu | log_var], single (128, 2*latent) MXU pass
    head = jnp.dot(h1, w2_ref[...], preferred_element_type=jnp.float32) + b2_ref[...]
    mu = head[:, 0:LATENT_DIM]                                       # (TB, 2)
    log_var = head[:, LATENT_DIM:2 * LATENT_DIM]                     # (TB, 2)

    # ---- reparameterize ----
    std = jnp.exp(0.5 * log_var)
    z = mu + eps_ref[...] * std                                      # (TB, 2)

    # ---- decoder ----
    # K=2 contraction done as a VPU outer product (skip MXU push/pop latency).
    h2 = b3_ref[...]                                                 # (1, 128)
    for j in range(LATENT_DIM):
        h2 = h2 + z[:, j:j + 1] * w3_ref[j:j + 1, :]                 # (TB, 128)
    h2 = jnp.maximum(h2, 0.0)

    # W4/b4 are zero-padded to 128 output lanes -> lane-dense unmasked store.
    logits = jnp.dot(h2, w4_ref[...], preferred_element_type=jnp.float32) + b4_ref[...]
    # Exact sigmoid (matches torch.sigmoid / jax.nn.sigmoid to f32 precision).
    recon = 1.0 / (1.0 + jnp.exp(-logits))

    head_ref[...] = head.astype(head_ref.dtype)
    recon_ref[...] = recon.astype(recon_ref.dtype)


def vae_forward(x, eps, params, *, max_block_b=MAX_BLOCK_B):
    """x: (B, INPUT_DIM) f32, eps: (B, LATENT_DIM) f32 -> (recon, mu, log_var)."""
    B = x.shape[0]

    # batch tiling: tile must be a multiple of 8 sublanes; pad batch to tile.
    tb = min(max_block_b, _round_up(B, 8))
    b_pad = _round_up(B, tb)
    if b_pad != B:
        x = jnp.pad(x, ((0, b_pad - B), (0, 0)))
        eps = jnp.pad(eps, ((0, b_pad - B), (0, 0)))
    grid = (b_pad // tb,)

    # zero-pad the output head of the decoder to a full 128-lane width
    w4p = jnp.pad(params["w4"], ((0, 0), (0, OUT_PAD - INPUT_DIM)))
    b4p = jnp.pad(params["b4"], ((0, 0), (0, OUT_PAD - INPUT_DIM)))

    # batch-tiled activation specs
    def act_spec(feat):
        return pl.BlockSpec((tb, feat), lambda i: (i, 0))

    # VMEM-resident weight/bias specs (constant block index => DMA'd once)
    def res_spec(shape):
        return pl.BlockSpec(shape, lambda i: (0, 0))

    in_specs = [
        act_spec(INPUT_DIM),                       # x
        act_spec(LATENT_DIM),                      # eps
        res_spec((INPUT_DIM, HIDDEN)),             # w1
        res_spec((1, HIDDEN)),                     # b1
        res_spec((HIDDEN, 2 * LATENT_DIM)),        # w2 (fused mu|log_var head)
        res_spec((1, 2 * LATENT_DIM)),             # b2
        res_spec((LATENT_DIM, HIDDEN)),            # w3
        res_spec((1, HIDDEN)),                     # b3
        res_spec((HIDDEN, OUT_PAD)),               # w4 (padded)
        res_spec((1, OUT_PAD)),                    # b4 (padded)
    ]
    out_specs = (
        act_spec(2 * LATENT_DIM),                  # head = [mu | log_var]
        act_spec(OUT_PAD),                         # recon (padded, lane-dense)
    )
    out_shape = (
        jax.ShapeDtypeStruct((b_pad, 2 * LATENT_DIM), jnp.float32),
        jax.ShapeDtypeStruct((b_pad, OUT_PAD), jnp.float32),
    )

    flops = 2 * b_pad * (INPUT_DIM * HIDDEN + HIDDEN * 2 * LATENT_DIM
                         + LATENT_DIM * HIDDEN + HIDDEN * OUT_PAD)
    transcendentals = b_pad * (LATENT_DIM + OUT_PAD)        # exp(std) + exp (sigmoid)
    weight_bytes = 4 * (INPUT_DIM * HIDDEN + HIDDEN + HIDDEN * 2 * LATENT_DIM
                        + 2 * LATENT_DIM + LATENT_DIM * HIDDEN + HIDDEN
                        + HIDDEN * OUT_PAD + OUT_PAD)
    act_bytes = 4 * b_pad * (INPUT_DIM + LATENT_DIM + 2 * LATENT_DIM + OUT_PAD)
    cost = pl.CostEstimate(flops=flops, transcendentals=transcendentals,
                           bytes_accessed=weight_bytes + act_bytes)

    head, recon_pad = pl.pallas_call(
        vae_forward_kernel,
        out_shape=out_shape,
        grid=grid,
        in_specs=in_specs,
        out_specs=out_specs,
        compiler_params=pltpu.CompilerParams(
            dimension_semantics=("parallel",)),
        cost_estimate=cost,
    )(
        x, eps,
        params["w1"], params["b1"],
        params["w2"], params["b2"],
        params["w3"], params["b3"],
        w4p, b4p,
    )

    recon = recon_pad[:B, :INPUT_DIM]
    mu = head[:B, :LATENT_DIM]
    log_var = head[:B, LATENT_DIM:]
    return recon, mu, log_var


def init_params(key):
    """Deterministic init mimicking nn.Linear default U(-1/sqrt(fan_in), +1/sqrt(fan_in))."""
    def linear(key, fan_in, fan_out):
        kw, kb = jax.random.split(key)
        bound = 1.0 / jnp.sqrt(jnp.float32(fan_in))
        w = jax.random.uniform(kw, (fan_in, fan_out), jnp.float32, -bound, bound)
        b = jax.random.uniform(kb, (1, fan_out), jnp.float32, -bound, bound)
        return w, b

    k1, k2, k3, k4 = jax.random.split(key, 4)
    w1, b1 = linear(k1, INPUT_DIM, HIDDEN)            # encoder Linear 0
    w2, b2 = linear(k2, HIDDEN, 2 * LATENT_DIM)       # encoder Linear 2 (fused head)
    w3, b3 = linear(k3, LATENT_DIM, HIDDEN)           # decoder Linear 0
    w4, b4 = linear(k4, HIDDEN, INPUT_DIM)            # decoder Linear 2
    return {"w1": w1, "b1": b1, "w2": w2, "b2": b2,
            "w3": w3, "b3": b3, "w4": w4, "b4": b4}


def vae_ref(x, eps, p):
    """Pure-JAX reference for sanity checking (mirrors the PyTorch module)."""
    h1 = jnp.maximum(x @ p["w1"] + p["b1"], 0.0)
    head = h1 @ p["w2"] + p["b2"]
    mu, lv = head[:, :LATENT_DIM], head[:, LATENT_DIM:]         # torch.chunk(h, 2, dim=1)
    z = mu + eps * jnp.exp(0.5 * lv)
    h2 = jnp.maximum(z @ p["w3"] + p["b3"], 0.0)
    recon = jax.nn.sigmoid(h2 @ p["w4"] + p["b4"])
    return recon, mu, lv


if __name__ == "__main__":
    key = jax.random.PRNGKey(0)
    kx, keps, kp = jax.random.split(key, 3)

    B = 8
    x = jax.random.normal(kx, (B, INPUT_DIM), jnp.float32)        # standardized features
    # TODO(synk): torch.randn_like(std) is drawn inside forward(); here the Gaussian
    # noise is generated host-side and passed in explicitly for determinism.
    eps = jax.random.normal(keps, (B, LATENT_DIM), jnp.float32)
    params = init_params(kp)

    recon, mu, log_var = vae_forward(x, eps, params)
    jax.block_until_ready((recon, mu, log_var))

    r_ref, mu_ref, lv_ref = vae_ref(x, eps, params)
    # All paths are exact f32 now (no approximate reciprocal); tolerances cover
    # MXU-vs-XLA f32 matmul rounding differences only.
    assert jnp.allclose(mu, mu_ref, atol=1e-4), "mu mismatch"
    assert jnp.allclose(log_var, lv_ref, atol=1e-4), "log_var mismatch"
    assert jnp.allclose(recon, r_ref, atol=1e-4), "recon mismatch"

    print("KERNEL_OK")
</pallas_src>

<mosaic_0001>
module attributes {stable_mosaic.version = 11 : i64} {
  func.func @vae_forward_kernel(%arg0: i32, %arg1: memref<8x13xf32, #tpu.memory_space<vmem>>, %arg2: memref<8x2xf32, #tpu.memory_space<vmem>>, %arg3: memref<13x128xf32, #tpu.memory_space<vmem>>, %arg4: memref<1x128xf32, #tpu.memory_space<vmem>>, %arg5: memref<128x4xf32, #tpu.memory_space<vmem>>, %arg6: memref<1x4xf32, #tpu.memory_space<vmem>>, %arg7: memref<2x128xf32, #tpu.memory_space<vmem>>, %arg8: memref<1x128xf32, #tpu.memory_space<vmem>>, %arg9: memref<128x128xf32, #tpu.memory_space<vmem>>, %arg10: memref<1x128xf32, #tpu.memory_space<vmem>>, %arg11: memref<8x4xf32, #tpu.memory_space<vmem>>, %arg12: memref<8x128xf32, #tpu.memory_space<vmem>>) attributes {dimension_semantics = [#tpu.dimension_semantics<parallel>], iteration_bounds = array<i64: 1>, scalar_prefetch = 0 : i64, scratch_operands = 0 : i64, tpu.core_type = #tpu.core_type<tc>, window_params = [{transform_indices = @transform_0, window_bounds = array<i64: 8, 13>}, {transform_indices = @transform_1, window_bounds = array<i64: 8, 2>}, {pipeline_mode = #tpu.pipeline_mode<synchronous>, transform_indices = @transform_2, window_bounds = array<i64: 13, 128>}, {pipeline_mode = #tpu.pipeline_mode<synchronous>, transform_indices = @transform_3, window_bounds = array<i64: 1, 128>}, {pipeline_mode = #tpu.pipeline_mode<synchronous>, transform_indices = @transform_4, window_bounds = array<i64: 128, 4>}, {pipeline_mode = #tpu.pipeline_mode<synchronous>, transform_indices = @transform_5, window_bounds = array<i64: 1, 4>}, {pipeline_mode = #tpu.pipeline_mode<synchronous>, transform_indices = @transform_6, window_bounds = array<i64: 2, 128>}, {pipeline_mode = #tpu.pipeline_mode<synchronous>, transform_indices = @transform_7, window_bounds = array<i64: 1, 128>}, {pipeline_mode = #tpu.pipeline_mode<synchronous>, transform_indices = @transform_8, window_bounds = array<i64: 128, 128>}, {pipeline_mode = #tpu.pipeline_mode<synchronous>, transform_indices = @transform_9, window_bounds = array<i64: 1, 128>}, {transform_indices = @transform_10, window_bounds = array<i64: 8, 4>}, {transform_indices = @transform_11, window_bounds = array<i64: 8, 128>}]} {
    %c0 = arith.constant 0 : index
    %c0_0 = arith.constant 0 : index
    %0 = vector.load %arg1[%c0, %c0_0] : memref<8x13xf32, #tpu.memory_space<vmem>>, vector<8x13xf32>
    %c0_1 = arith.constant 0 : index
    %c0_2 = arith.constant 0 : index
    %1 = vector.load %arg3[%c0_1, %c0_2] : memref<13x128xf32, #tpu.memory_space<vmem>>, vector<13x128xf32>
    %cst = arith.constant dense<0.000000e+00> : vector<8x128xf32>
    %2 = tpu.matmul %0, %1, %cst {dimension_numbers = #tpu.dot_dimension_numbers<[1], [0], [0], [1], [0, 0, 1, 1], [], []>} : vector<8x13xf32>, vector<13x128xf32>, vector<8x128xf32> -> vector<8x128xf32>
    %c0_3 = arith.constant 0 : index
    %c0_4 = arith.constant 0 : index
    %3 = vector.load %arg4[%c0_3, %c0_4] : memref<1x128xf32, #tpu.memory_space<vmem>>, vector<1x128xf32>
    %4 = vector.broadcast %3 : vector<1x128xf32> to vector<8x128xf32>
    %5 = arith.addf %2, %4 : vector<8x128xf32>
    %cst_5 = arith.constant 0.000000e+00 : f32
    %6 = vector.broadcast %cst_5 : f32 to vector<8x128xf32>
    %7 = arith.maximumf %5, %6 : vector<8x128xf32>
    %c0_6 = arith.constant 0 : index
    %c0_7 = arith.constant 0 : index
    %8 = vector.load %arg5[%c0_6, %c0_7] : memref<128x4xf32, #tpu.memory_space<vmem>>, vector<128x4xf32>
    %cst_8 = arith.constant dense<0.000000e+00> : vector<8x4xf32>
    %9 = tpu.matmul %7, %8, %cst_8 {dimension_numbers = #tpu.dot_dimension_numbers<[1], [0], [0], [1], [0, 0, 1, 1], [], []>} : vector<8x128xf32>, vector<128x4xf32>, vector<8x4xf32> -> vector<8x4xf32>
    %c0_9 = arith.constant 0 : index
    %c0_10 = arith.constant 0 : index
    %10 = vector.load %arg6[%c0_9, %c0_10] : memref<1x4xf32, #tpu.memory_space<vmem>>, vector<1x4xf32>
    %11 = vector.broadcast %10 : vector<1x4xf32> to vector<8x4xf32>
    %12 = arith.addf %9, %11 : vector<8x4xf32>
    %13 = vector.extract_strided_slice %12 {offsets = [0, 0], sizes = [8, 2], strides = [1, 1]} : vector<8x4xf32> to vector<8x2xf32>
    %14 = vector.extract_strided_slice %12 {offsets = [0, 2], sizes = [8, 2], strides = [1, 1]} : vector<8x4xf32> to vector<8x2xf32>
    %cst_11 = arith.constant 5.000000e-01 : f32
    %15 = vector.broadcast %cst_11 : f32 to vector<8x2xf32>
    %16 = arith.mulf %15, %14 : vector<8x2xf32>
    %17 = math.exp %16 : vector<8x2xf32>
    %c0_12 = arith.constant 0 : index
    %c0_13 = arith.constant 0 : index
    %18 = vector.load %arg2[%c0_12, %c0_13] : memref<8x2xf32, #tpu.memory_space<vmem>>, vector<8x2xf32>
    %19 = arith.mulf %18, %17 : vector<8x2xf32>
    %20 = arith.addf %13, %19 : vector<8x2xf32>
    %c0_14 = arith.constant 0 : index
    %c0_15 = arith.constant 0 : index
    %21 = vector.load %arg8[%c0_14, %c0_15] : memref<1x128xf32, #tpu.memory_space<vmem>>, vector<1x128xf32>
    %22 = vector.extract_strided_slice %20 {offsets = [0, 0], sizes = [8, 1], strides = [1, 1]} : vector<8x2xf32> to vector<8x1xf32>
    %c0_16 = arith.constant 0 : index
    %c0_17 = arith.constant 0 : index
    %23 = vector.load %arg7[%c0_16, %c0_17] : memref<2x128xf32, #tpu.memory_space<vmem>>, vector<1x128xf32>
    %24 = vector.broadcast %22 : vector<8x1xf32> to vector<8x128xf32>
    %25 = vector.broadcast %23 : vector<1x128xf32> to vector<8x128xf32>
    %26 = arith.mulf %24, %25 : vector<8x128xf32>
    %27 = vector.broadcast %21 : vector<1x128xf32> to vector<8x128xf32>
    %28 = arith.addf %27, %26 : vector<8x128xf32>
    %29 = vector.extract_strided_slice %20 {offsets = [0, 1], sizes = [8, 1], strides = [1, 1]} : vector<8x2xf32> to vector<8x1xf32>
    %c1 = arith.constant 1 : index
    %c0_18 = arith.constant 0 : index
    %30 = vector.load %arg7[%c1, %c0_18] : memref<2x128xf32, #tpu.memory_space<vmem>>, vector<1x128xf32>
    %31 = vector.broadcast %29 : vector<8x1xf32> to vector<8x128xf32>
    %32 = vector.broadcast %30 : vector<1x128xf32> to vector<8x128xf32>
    %33 = arith.mulf %31, %32 : vector<8x128xf32>
    %34 = arith.addf %28, %33 : vector<8x128xf32>
    %cst_19 = arith.constant 0.000000e+00 : f32
    %35 = vector.broadcast %cst_19 : f32 to vector<8x128xf32>
    %36 = arith.maximumf %34, %35 : vector<8x128xf32>
    %c0_20 = arith.constant 0 : index
    %c0_21 = arith.constant 0 : index
    %37 = vector.load %arg9[%c0_20, %c0_21] : memref<128x128xf32, #tpu.memory_space<vmem>>, vector<128x128xf32>
    %cst_22 = arith.constant dense<0.000000e+00> : vector<8x128xf32>
    %38 = tpu.matmul %36, %37, %cst_22 {dimension_numbers = #tpu.dot_dimension_numbers<[1], [0], [0], [1], [0, 0, 1, 1], [], []>} : vector<8x128xf32>, vector<128x128xf32>, vector<8x128xf32> -> vector<8x128xf32>
    %c0_23 = arith.constant 0 : index
    %c0_24 = arith.constant 0 : index
    %39 = vector.load %arg10[%c0_23, %c0_24] : memref<1x128xf32, #tpu.memory_space<vmem>>, vector<1x128xf32>
    %40 = vector.broadcast %39 : vector<1x128xf32> to vector<8x128xf32>
    %41 = arith.addf %38, %40 : vector<8x128xf32>
    %cst_25 = arith.constant 0.000000e+00 : f32
    %42 = vector.broadcast %cst_25 : f32 to vector<8x128xf32>
    %43 = arith.subf %42, %41 : vector<8x128xf32>
    %44 = math.exp %43 : vector<8x128xf32>
    %cst_26 = arith.constant 1.000000e+00 : f32
    %45 = vector.broadcast %cst_26 : f32 to vector<8x128xf32>
    %46 = arith.addf %45, %44 : vector<8x128xf32>
    %cst_27 = arith.constant 1.000000e+00 : f32
    %47 = vector.broadcast %cst_27 : f32 to vector<8x128xf32>
    %48 = arith.divf %47, %46 : vector<8x128xf32>
    %c0_28 = arith.constant 0 : index
    %c0_29 = arith.constant 0 : index
    %49 = vector.load %arg11[%c0_28, %c0_29] : memref<8x4xf32, #tpu.memory_space<vmem>>, vector<8x4xf32>
    tpu.vector_store %arg11[%c0_28, %c0_29], %12 {strides = array<i32>} : memref<8x4xf32, #tpu.memory_space<vmem>>, vector<8x4xf32>,
    %c0_30 = arith.constant 0 : index
    %c0_31 = arith.constant 0 : index
    %50 = vector.load %arg12[%c0_30, %c0_31] : memref<8x128xf32, #tpu.memory_space<vmem>>, vector<8x128xf32>
    tpu.vector_store %arg12[%c0_30, %c0_31], %48 {strides = array<i32>} : memref<8x128xf32, #tpu.memory_space<vmem>>, vector<8x128xf32>,
    return
  }
  func.func @transform_0(%arg0: i32) -> (i32, i32) {
    %c0_i32 = arith.constant 0 : i32
    %c0_i32_0 = arith.constant 0 : i32
    return %arg0, %c0_i32 : i32, i32
  }
  func.func @transform_1(%arg0: i32) -> (i32, i32) {
    %c0_i32 = arith.constant 0 : i32
    %c0_i32_0 = arith.constant 0 : i32
    return %arg0, %c0_i32 : i32, i32
  }
  func.func @transform_2(%arg0: i32) -> (i32, i32) {
    %c0_i32 = arith.constant 0 : i32
    %c0_i32_0 = arith.constant 0 : i32
    %c0_i32_1 = arith.constant 0 : i32
    return %c0_i32, %c0_i32_0 : i32, i32
  }
  func.func @transform_3(%arg0: i32) -> (i32, i32) {
    %c0_i32 = arith.constant 0 : i32
    %c0_i32_0 = arith.constant 0 : i32
    %c0_i32_1 = arith.constant 0 : i32
    return %c0_i32, %c0_i32_0 : i32, i32
  }
  func.func @transform_4(%arg0: i32) -> (i32, i32) {
    %c0_i32 = arith.constant 0 : i32
    %c0_i32_0 = arith.constant 0 : i32
    %c0_i32_1 = arith.constant 0 : i32
    return %c0_i32, %c0_i32_0 : i32, i32
  }
  func.func @transform_5(%arg0: i32) -> (i32, i32) {
    %c0_i32 = arith.constant 0 : i32
    %c0_i32_0 = arith.constant 0 : i32
    %c0_i32_1 = arith.constant 0 : i32
    return %c0_i32, %c0_i32_0 : i32, i32
  }
  func.func @transform_6(%arg0: i32) -> (i32, i32) {
    %c0_i32 = arith.constant 0 : i32
    %c0_i32_0 = arith.constant 0 : i32
    %c0_i32_1 = arith.constant 0 : i32
    return %c0_i32, %c0_i32_0 : i32, i32
  }
  func.func @transform_7(%arg0: i32) -> (i32, i32) {
    %c0_i32 = arith.constant 0 : i32
    %c0_i32_0 = arith.constant 0 : i32
    %c0_i32_1 = arith.constant 0 : i32
    return %c0_i32, %c0_i32_0 : i32, i32
  }
  func.func @transform_8(%arg0: i32) -> (i32, i32) {
    %c0_i32 = arith.constant 0 : i32
    %c0_i32_0 = arith.constant 0 : i32
    %c0_i32_1 = arith.constant 0 : i32
    return %c0_i32, %c0_i32_0 : i32, i32
  }
  func.func @transform_9(%arg0: i32) -> (i32, i32) {
    %c0_i32 = arith.constant 0 : i32
    %c0_i32_0 = arith.constant 0 : i32
    %c0_i32_1 = arith.constant 0 : i32
    return %c0_i32, %c0_i32_0 : i32, i32
  }
  func.func @transform_10(%arg0: i32) -> (i32, i32) {
    %c0_i32 = arith.constant 0 : i32
    %c0_i32_0 = arith.constant 0 : i32
    return %arg0, %c0_i32 : i32, i32
  }
  func.func @transform_11(%arg0: i32) -> (i32, i32) {
    %c0_i32 = arith.constant 0 : i32
    %c0_i32_0 = arith.constant 0 : i32
    return %arg0, %c0_i32 : i32, i32
  }
}

</mosaic_0001>

<bundles_post_ra>
// kernel: tpu_custom_call.1
= control target key start
LH: loop header
LB: loop body
LE: loop exit
PB: predicated region body
PF: predicated region fallthrough
CT: control target
= control target key end

     0   :  { %vm52_vm0 = vcmask 1044480   ;;  %v596_v2 = vmov 0.0|0.0   ;;  %vm597_vm1 = vmmov 1   ;;  %vm598_vm3 = vmmov 0   ;;  %s825_s0 = inlined_call_operand.vmem [shape: f32[8,13], index: 0, kind: input, shape index: {}]   ;;  %s826_s1 = inlined_call_operand.vmem [shape: f32[8,2], index: 1, kind: input, shape index: {}]   ;;  %s827_s2 = inlined_call_operand.vmem [shape: f32[13,128], index: 2, kind: input, shape index: {}]   ;;  %s828_s3 = inlined_call_operand.vmem [shape: f32[1,128], index: 3, kind: input, shape index: {}]   ;;  %s829_s4 = inlined_call_operand.vmem [shape: f32[128,4], index: 4, kind: input, shape index: {}]   ;;  %s830_s5 = inlined_call_operand.vmem [shape: f32[1,4], index: 5, kind: input, shape index: {}]   ;;  %s831_s6 = inlined_call_operand.vmem [shape: f32[2,128], index: 6, kind: input, shape index: {}]   ;;  %s832_s7 = inlined_call_operand.vmem [shape: f32[1,128], index: 7, kind: input, shape index: {}]   ;;  %s833_s8 = inlined_call_operand.vmem [shape: f32[128,128], index: 8, kind: input, shape index: {}]   ;;  %s834_s9 = inlined_call_operand.vmem [shape: f32[1,128], index: 9, kind: input, shape index: {}]   ;;  %s835_s10 = inlined_call_operand.vmem [shape: f32[8,4], index: 10, kind: output, shape index: {0}]   ;;  %s836_s11 = inlined_call_operand.hbm [shape: f32[8,128], index: 11, kind: output, shape index: {1}]  }
   0x1   :  { %v39_v0 = vld [vmem:[%s827_s2] sm:$0xff]  ;;  %v40_v1 = vld [vmem:[%s827_s2 + $0x8] sm:$0x1f]  ;;  %503 = vmatprep.subr.bf16.mxu0 %v596_v2  ;;  %vm505_vm2 = vmpackc.low %vm52_vm0, %vm597_vm1  ;;  %507 = vmatprep.subr.bf16.mxu1 %v596_v2  ;;  %v599_v5 = vmov 0.0   ;;  %vm48_vm4 = vcmask 105472  }
   0x2   :  { %v504_v3 = vpack.c.bf16 %v40_v1, %v39_v0  ;;  %v127_v4 = vld [vmem:[%s829_s4] sm:$0xff]  ;;  %430 = vmatprep.mubr.msk.f32.mxu0 %vm598_vm3, %v599_v5  ;;  %v128_v6 = vld [vmem:[%s829_s4 + $0x8] sm:$0xff]  ;;  %v129_v7 = vld [vmem:[%s829_s4 + $0x10] sm:$0xff]  ;;  %465 = vmatprep.mubr.msk.f32.mxu1 %vm598_vm3, %v599_v5 }
   0x3   :  { %v130_v8 = vld [vmem:[%s829_s4 + $0x18] sm:$0xff]  ;;  %v38_v9 = vld [vmem:[%s825_s0] sm:$0xff]  ;;  %v508_v10 = vpack.c.bf16 %v128_v6, %v127_v4  ;;  %v132_v13 = vld [vmem:[%s829_s4 + $0x28] sm:$0xff] }
   0x4   :  { %506 = vmatpush3.bf16.msk.msra.mxu0 %vm505_vm2, %v504_v3  ;;  %v511_v11 = vpack.c.bf16 %v130_v8, %v129_v7  ;;  %v131_v12 = vld [vmem:[%s829_s4 + $0x20] sm:$0xff] }
   0x5   :  { %531 = vmatprep.subr.bf16.mxu0 %v596_v2  ;;  %509 = vmatpush3.bf16.msra.mxu1 %v508_v10 }
   0x6   :  { %510 = vmatprep.subr.bf16.mxu1 %v596_v2 }
   0x7   :  { %431 = vmatmul.mubr.msk.f32.vlgmr.msra.gmra.mrb[0].mxu0 %vm48_vm4, %v38_v9 }
   0x8   :  { %17 = vsyncpa [#allocation3], 0  ;;  %500 = vmatprep.mubr.msk.f32.mxu0 %vm598_vm3, %v599_v5  ;;  %v514_v14 = vpack.c.bf16 %v132_v13, %v131_v12  ;;  %v133_v15 = vld [vmem:[%s829_s4 + $0x30] sm:$0xff]  ;;  %v134_v16 = vld [vmem:[%s829_s4 + $0x38] sm:$0xff]  ;;  %vm360_vm5 = vcmask 31744   ;;  %v600_v41 = vmov 1  }
   0x9   :  { %512 = vmatpush3.bf16.msra.mxu1 %v511_v11  ;;  %v517_v17 = vpack.c.bf16 %v134_v16, %v133_v15  ;;  %v135_v18 = vld [vmem:[%s829_s4 + $0x40] sm:$0xff]  ;;  %v136_v19 = vld [vmem:[%s829_s4 + $0x48] sm:$0xff]  ;;  %v137_v21 = vld [vmem:[%s829_s4 + $0x50] sm:$0xff]  ;;  %564 = vset.pattern.permute.xlu1 %v600_v41  ;;  %v601_v42 = vmov 0   ;;  %s602_s30 = smov 126  }
   0xa   :  { %513 = vmatprep.subr.bf16.mxu1 %v596_v2  ;;  %v520_v20 = vpack.c.bf16 %v136_v19, %v135_v18  ;;  %v138_v22 = vld [vmem:[%s829_s4 + $0x58] sm:$0xff]  ;;  %v139_v24 = vld [vmem:[%s829_s4 + $0x60] sm:$0xff]  ;;  %v140_v25 = vld [vmem:[%s829_s4 + $0x68] sm:$0xff]  ;;  %563 = vset.pattern.permute.xlu0 %v601_v42 }
   0xb   :  { %v523_v23 = vpack.c.bf16 %v138_v22, %v137_v21  ;;  %v526_v26 = vpack.c.bf16 %v140_v25, %v139_v24  ;;  %v141_v27 = vld [vmem:[%s829_s4 + $0x70] sm:$0xff]  ;;  %v142_v28 = vld [vmem:[%s829_s4 + $0x78] sm:$0xff]  ;;  %v381_v30 = vld [vmem:[%s828_s3] ss:$0 sm:$0xff] }
   0xc   :  { %v529_v29 = vpack.c.bf16 %v142_v28, %v141_v27  ;;  %v384_v35 = vld [vmem:[%s830_s5] ss:$0 sm:$0xff]  ;;  %v262_v44 = vld [vmem:[%s833_s8 + $0x8] sm:$0xff]  ;;  %v263_v45 = vld [vmem:[%s833_s8 + $0x10] sm:$0xff] }
   0xd   :  { %515 = vmatpush3.bf16.msra.mxu1 %v514_v14  ;;  %v261_v43 = vld [vmem:[%s833_s8] sm:$0xff]  ;;  %v264_v47 = vld [vmem:[%s833_s8 + $0x18] sm:$0xff]  ;;  %v266_v50 = vld [vmem:[%s833_s8 + $0x28] sm:$0xff] }
   0xe   :  { %516 = vmatprep.subr.bf16.mxu1 %v596_v2  ;;  %v532_v46 = vpack.c.bf16 %v262_v44, %v261_v43  ;;  %v535_v48 = vpack.c.bf16 %v264_v47, %v263_v45  ;;  %v265_v49 = vld [vmem:[%s833_s8 + $0x20] sm:$0xff]  ;;  %v267_v53 = vld [vmem:[%s833_s8 + $0x30] sm:$0xff]  ;;  %v268_v54 = vld [vmem:[%s833_s8 + $0x38] sm:$0xff] }
   0xf   :  { %v538_v51 = vpack.c.bf16 %v266_v50, %v265_v49  ;;  %v541_v55 = vpack.c.bf16 %v268_v54, %v267_v53  ;;  %v269_v56 = vld [vmem:[%s833_s8 + $0x40] sm:$0xff]  ;;  %v270_v57 = vld [vmem:[%s833_s8 + $0x48] sm:$0xff]  ;;  %v271_v59 = vld [vmem:[%s833_s8 + $0x50] sm:$0xff] }
  0x10   :  { %533 = vmatpush3.bf16.msra.mxu0 %v532_v46  ;;  %v544_v58 = vpack.c.bf16 %v270_v57, %v269_v56  ;;  %v272_v60 = vld [vmem:[%s833_s8 + $0x58] sm:$0xff]  ;;  %v223_v62 = vld [vmem:[%s826_s1] sm:$0xff]  ;;  %v274_v4 = vld [vmem:[%s833_s8 + $0x68] sm:$0xff] }
  0x11   :  { %518 = vmatpush3.bf16.msra.mxu1 %v517_v17  ;;  %534 = vmatprep.subr.bf16.mxu0 %v596_v2  ;;  %v547_v61 = vpack.c.bf16 %v272_v60, %v271_v59  ;;  %v273_v3 = vld [vmem:[%s833_s8 + $0x60] sm:$0xff]  ;;  %v275_v6 = vld [vmem:[%s833_s8 + $0x70] sm:$0xff]  ;;  %v276_v7 = vld [vmem:[%s833_s8 + $0x78] sm:$0xff] }
  0x12   :  { %519 = vmatprep.subr.bf16.mxu1 %v596_v2  ;;  %v550_v5 = vpack.c.bf16 %v274_v4, %v273_v3  ;;  %v553_v8 = vpack.c.bf16 %v276_v7, %v275_v6  ;;  %v385_v9 = vld [vmem:[%s831_s6] ss:$0 sm:$0xff]  ;;  %v387_v10 = vld [vmem:[%s831_s6 + $0x1] ss:$0 sm:$0xff]  ;;  %s603_s6 = smov [#allocation2]  }
  0x13   :  { %v386_v11 = vld [vmem:[%s832_s7] ss:$0 sm:$0xff]  ;;  %s371_s7 = sshll.u32 %s603_s6, 4  ;;  %s372_s7 = int_to_ptr.vmem [resolvable:$true] %s371_s7 }
  0x14   :  { %536 = vmatpush3.bf16.msra.mxu0 %v535_v48  ;;  %v388_v18 = vld [vmem:[%s834_s9] ss:$0 sm:$0xff]  ;;  %p577_p1 = scmp.lt.s32.totalorder %s372_s7, %s372_s7 }
  0x15   :  { %521 = vmatpush3.bf16.msra.mxu1 %v520_v20  ;;  %537 = vmatprep.subr.bf16.mxu0 %v596_v2 }
  0x16   :  { %522 = vmatprep.subr.bf16.mxu1 %v596_v2 }
  0x18   :  { %539 = vmatpush3.bf16.msra.mxu0 %v538_v51 }
  0x19   :  { %524 = vmatpush3.bf16.msra.mxu1 %v523_v23  ;;  %540 = vmatprep.subr.bf16.mxu0 %v596_v2 }
  0x1a   :  { %525 = vmatprep.subr.bf16.mxu1 %v596_v2 }
  0x1c   :  { %542 = vmatpush3.bf16.msra.mxu0 %v541_v55 }
  0x1d   :  { %527 = vmatpush3.bf16.msra.mxu1 %v526_v26  ;;  %543 = vmatprep.subr.bf16.mxu0 %v596_v2 }
  0x1e   :  { %528 = vmatprep.subr.bf16.mxu1 %v596_v2 }
  0x20   :  { %545 = vmatpush3.bf16.msra.mxu0 %v544_v58 }
  0x21   :  { %530 = vmatpush3.bf16.msra.mxu1 %v529_v29  ;;  %546 = vmatprep.subr.bf16.mxu0 %v596_v2 }
  0x24   :  { %548 = vmatpush3.bf16.msra.mxu0 %v547_v61 }
  0x25   :  { %549 = vmatprep.subr.bf16.mxu0 %v596_v2 }
  0x28   :  { %551 = vmatpush3.bf16.msra.mxu0 %v550_v5 }
  0x29   :  { %552 = vmatprep.subr.bf16.mxu0 %v596_v2 }
  0x2c   :  { %554 = vmatpush3.bf16.msra.mxu0 %v553_v8 }
  0xda   :  { %v122_v31 = vpop.f32.mrb[0].mxu0 }
  0xdb   :  { %v123_v32 = vadd.f32 %v381_v30, %v122_v31  ;;  %v432_v33 = vpop.f32.mrb[1].mxu0 }
  0xdd   :  { %v126_v34 = vmax.f32 %v123_v32, 0.0 }
  0xdf   :  { %466 = vmatmul.mubr.f32.vlgmr.msra.gmra.mrb[0].mxu1 %v126_v34 }
 0x1b2   :  { %v216_v36 = vpop.f32.mrb[0].mxu1 }
 0x1b3   :  { %v217_v37 = vadd.f32 %v384_v35, %v216_v36  ;;  %v467_v38 = vpop.f32.mrb[1].mxu1 }
 0x1b5   :  { %v220_v39 = vmul.f32 0.5, %v217_v37  ;;  %361 = vst.msk [vmem:[%s835_s10] sm:$0xff] %vm360_vm5, %v217_v37 }
 0x1b7   :  { %v221_v40 = vmul.f32 1.442695, %v220_v39 }
 0x1b9   :  { %566 = vpow2.f32 %v221_v40 }
 0x1c3   :  { %v567_v52 = vpop.eup %566 }
 0x1c4   :  { %225 = vrot.lane.b32.xlu0 %v567_v52, %s602_s30  ;;  %s572_s30 = scalar_lea.vmem %s372_s7, 128 }
 0x1c5   :  { %p573_p0 = scmp.ne.s32.totalorder %s372_s7, %s572_s30  ;;  %p578_p2 = scmp.lt.s32.totalorder %s572_s30, %s572_s30 }
 0x1c7   :  { %p579_p3 = por %p578_p2, %p577_p1 }
 0x1c9   :  { %p580_p4 = pnand %p579_p3, %p573_p0 }
 0x236   :  { %v226_v63 = vpop.permute.xlu0 %225 }
 0x237   :  { %v228_v0 = vmul.f32 %v226_v63, %v223_v62 }
 0x239   :  { %v229_v1 = vadd.f32 %v228_v0, %v217_v37 }
 0x23b   :  { %251 = vperm.xlu1 %564, %v229_v1   ;;  %234 = vperm.xlu0 %563, %v229_v1  }
 0x23f   :  { %565 = vset.pattern.permute.xlu0 %v600_v41 }
 0x2ba   :  { %v252_v2 = vpop.permute.xlu1 %251  ;;  %v235_v12 = vpop.permute.xlu0 %234 }
 0x2bb   :  { %v241_v13 = vmul.f32 %v385_v9, %v235_v12  ;;  %v258_v14 = vmul.f32 %v387_v10, %v252_v2 }
 0x2bd   :  { %v248_v15 = vadd.f32 %v386_v11, %v241_v13 }
 0x2bf   :  { %v259_v16 = vadd.f32 %v258_v14, %v248_v15 }
 0x2c1   :  { %v260_v17 = vmax.f32 %v259_v16, 0.0 }
 0x2c3   :  { %501 = vmatmul.mubr.f32.vlgmr.msra.gmra.mrb[2].mxu0 %v260_v17 }
 0x396   :  { %v350_v19 = vpop.f32.mrb[2].mxu0 }
 0x397   :  { %v351_v20 = vadd.f32 %v388_v18, %v350_v19  ;;  %v502_v21 = vpop.f32.mrb[3].mxu0 }
 0x399   :  { %v354_v22 = vsub.f32 0.0, %v351_v20 }
 0x39b   :  { %v355_v23 = vmul.f32 1.442695, %v354_v22 }
 0x39d   :  { %568 = vpow2.f32 %v355_v23 }
 0x3a7   :  { %v569_v24 = vpop.eup %568 }
 0x3a8   :  { %v357_v25 = vadd.f32 1.0, %v569_v24 }
 0x3aa   :  { %570 = vrcp.f32 %v357_v25 }
 0x3b4   :  { %v571_v26 = vpop.eup %570 }
 0x3b5   :  { %362 = vst [vmem:[#allocation2] sm:$0xff] %v571_v26 }
 0x3b6   :  { %583 = shalt.err (!%p580_p4)
}
 0x3b7   :  { %s584_s13 = scalar_lea.hbm %s836_s11, 128 }
 0x3b8   :  { %p585_p5 = scmp.ne.s32.totalorder %s836_s11, %s584_s13  ;;  %p588_p6 = scmp.lt.u32.totalorder %s584_s13, %s836_s11 }
 0x3ba   :  { %p590_p7 = pnand %p588_p6, %p585_p5 }
 0x3bc   :  { %593 = shalt.err (!%p590_p7)
}
 0x3bd   :  { %374 = dma.vmem_to_hbm [thread:$0]  %s372_s7, 128, %s836_s11, [#allocation3]  }
 0x3be   :  { %594 = dma.done.wait [#allocation3], 128  }
 0x3bf   :  { %595 = vsyncadd [#allocation3], 4294967168 }
 0x3c0   :  { %380 = vsyncpa [#allocation3], 1 }

</bundles_post_ra>
